<compile_context>
chip_gen: v6e
topology: v6e:2x2x1
jax: 0.10.0
libtpu: 0.0.40
codegen_flags: <defaults>
</compile_context>

<pallas_src>
import functools

import jax
import jax.numpy as jnp
from jax.experimental import pallas as pl
from jax.experimental.pallas import tpu as pltpu

LANE = 128


def _round_up(n: int, m: int = LANE) -> int:
    return ((n + m - 1) // m) * m


def _make_encoder_kernel(num_hidden_layers: int, mm_dtype, eps: float = 1e-5):
    """Fused encoder kernel.

    Ref ordering:
      x,                                           # (batch, in_pad), mm_dtype
      (W_i, b_i, gamma_i, beta_i) * num_hidden_layers,
      W_head, b_head,                              # [W_mu | W_logvar] fused
      out                                          # (batch, head_pad) f32
    All feature dims are already padded to multiples of 128 by the wrapper;
    weights are already in mm_dtype.
    """

    def kernel(*refs):
        x_ref = refs[0]
        idx = 1

        h = x_ref[...]                       # stays in mm_dtype for the MXU
        inv_b = jnp.float32(1.0 / h.shape[0])

        for _ in range(num_hidden_layers):
            w = refs[idx][...]
            b = refs[idx + 1][...]
            gamma = refs[idx + 2][...]
            beta = refs[idx + 3][...]
            idx += 4

            # Linear (MXU, f32 accumulation; operands may be bf16).
            z = jnp.dot(h, w, preferred_element_type=jnp.float32) + b

            # BatchNorm1d, training mode (biased variance), two-pass moments
            # to avoid E[z^2]-E[z]^2 cancellation.
            mean = jnp.sum(z, axis=0, keepdims=True) * inv_b
            zc = z - mean
            var = jnp.sum(zc * zc, axis=0, keepdims=True) * inv_b

            # Fold BN into per-feature scale/shift, fuse ReLU.
            # gamma is zero-padded -> padded lanes stay exactly 0.
            a = gamma * jax.lax.rsqrt(var + eps)
            h = jnp.maximum(zc * a + beta, 0.0).astype(mm_dtype)

        w_head = refs[idx][...]
        b_head = refs[idx + 1][...]
        out_ref = refs[idx + 2]

        # Fused mu/logvar head: one matmul, one lane-dense store.
        out_ref[...] = (jnp.dot(h, w_head, preferred_element_type=jnp.float32)
                        + b_head).astype(out_ref.dtype)

    return kernel


def init_encoder_params(key, input_dim, hidden_dims, latent_dim):
    """Deterministic parameter init (shapes mirror the PyTorch module;
    Linear weights stored pre-transposed as [in_features, out_features])."""
    params = []
    dims = [input_dim] + list(hidden_dims)
    for i in range(len(hidden_dims)):
        fan_in, fan_out = dims[i], dims[i + 1]
        key, kw, kb = jax.random.split(key, 3)
        bound = 1.0 / float(fan_in) ** 0.5
        w = jax.random.uniform(kw, (fan_in, fan_out), jnp.float32, -bound, bound)
        b = jax.random.uniform(kb, (fan_out,), jnp.float32, -bound, bound)
        gamma = jnp.ones((fan_out,), jnp.float32)
        beta = jnp.zeros((fan_out,), jnp.float32)
        params += [w, b, gamma, beta]

    fan_in = hidden_dims[-1]
    bound = 1.0 / float(fan_in) ** 0.5
    key, k1, k2, k3, k4 = jax.random.split(key, 5)
    w_mu = jax.random.uniform(k1, (fan_in, latent_dim), jnp.float32, -bound, bound)
    b_mu = jax.random.uniform(k2, (latent_dim,), jnp.float32, -bound, bound)
    w_lv = jax.random.uniform(k3, (fan_in, latent_dim), jnp.float32, -bound, bound)
    b_lv = jax.random.uniform(k4, (latent_dim,), jnp.float32, -bound, bound)
    params += [w_mu, b_mu, w_lv, b_lv]
    return params


def prepare_encoder_params(params, *, use_bf16_matmul=True):
    """One-time preparation of parameters for the kernel.

    Pads all feature axes to multiples of 128 (lane-dense), fuses the
    mu/logvar heads into a single [W_mu | W_logvar] matrix, and casts matmul
    operands to bf16 (f32 BN params / biases).  Call once and reuse the
    result: this keeps all padding / casting off the per-forward hot path.
    """
    mm_dtype = jnp.bfloat16 if use_bf16_matmul else jnp.float32
    num_hidden_layers = (len(params) - 4) // 4

    prepared = []
    prev_pad = _round_up(params[0].shape[0])            # padded input dim
    for l in range(num_hidden_layers):
        w, b, gamma, beta = params[4 * l:4 * l + 4]
        fan_in, fan_out = w.shape
        out_pad = _round_up(fan_out)
        wp = jnp.pad(w, ((0, prev_pad - fan_in),
                         (0, out_pad - fan_out))).astype(mm_dtype)
        bp = jnp.pad(b.reshape(1, -1), ((0, 0), (0, out_pad - fan_out)))
        # gamma padded with zeros -> padded lanes stay exactly 0 through BN/ReLU
        gp = jnp.pad(gamma.reshape(1, -1), ((0, 0), (0, out_pad - fan_out)))
        btp = jnp.pad(beta.reshape(1, -1), ((0, 0), (0, out_pad - fan_out)))
        prepared += [wp, bp, gp, btp]
        prev_pad = out_pad

    w_mu, b_mu, w_lv, b_lv = params[4 * num_hidden_layers:]
    w_head = jnp.concatenate([w_mu, w_lv], axis=1)       # [fan_in, 2*latent]
    b_head = jnp.concatenate([b_mu, b_lv], axis=0).reshape(1, -1)
    fan_in, head_out = w_head.shape
    head_pad = _round_up(head_out)
    w_head = jnp.pad(w_head, ((0, prev_pad - fan_in),
                              (0, head_pad - head_out))).astype(mm_dtype)
    b_head = jnp.pad(b_head, ((0, 0), (0, head_pad - head_out)))
    prepared += [w_head, b_head]

    # Materialize on device now so the forward path only DMAs them.
    return tuple(jax.device_put(p) for p in prepared)


@functools.partial(jax.jit, static_argnames=("num_hidden_layers", "latent_dim"))
def encoder_forward(x, prepared_params, *, num_hidden_layers, latent_dim):
    """Forward pass. `prepared_params` must come from prepare_encoder_params."""
    batch, input_dim = x.shape
    mm_dtype = prepared_params[0].dtype                 # bf16 or f32 (static)
    in_pad = prepared_params[0].shape[0]
    head_pad = prepared_params[-2].shape[1]

    # Only per-call data prep: pad x (already in the matmul dtype, so the
    # x HBM->VMEM DMA is halved in the bf16 path).  Batch is NOT padded.
    xp = jnp.pad(x.astype(mm_dtype), ((0, 0), (0, in_pad - input_dim)))
    kernel_args = (xp,) + tuple(prepared_params)

    # ---- vmem limit derived from the actual resident footprint ----------
    arg_bytes = sum(int(a.size) * a.dtype.itemsize for a in kernel_args)
    out_bytes = batch * head_pad * 4
    widest = max(a.shape[-1] for a in kernel_args if a.ndim == 2)
    act_bytes = 4 * batch * widest * 4                  # z/zc/h f32 temporaries
    vmem_limit = int(1.5 * (arg_bytes + out_bytes + act_bytes)) + (4 << 20)
    vmem_limit = min(max(vmem_limit, 16 << 20), 100 << 20)

    # ---- cost estimate (advisory for XLA's scheduler) --------------------
    flops = 0
    trans = 0
    idx = 0
    for _ in range(num_hidden_layers):
        w = prepared_params[idx]
        flops += 2 * batch * w.shape[0] * w.shape[1]
        trans += w.shape[1]                             # one rsqrt per feature
        idx += 4
    w_head = prepared_params[idx]
    flops += 2 * batch * w_head.shape[0] * w_head.shape[1]
    cost = pl.CostEstimate(flops=flops, transcendentals=trans,
                           bytes_accessed=arg_bytes + out_bytes)

    kernel = _make_encoder_kernel(num_hidden_layers, mm_dtype)
    out = pl.pallas_call(
        kernel,
        out_shape=jax.ShapeDtypeStruct((batch, head_pad), jnp.float32),
        in_specs=[pl.BlockSpec(memory_space=pltpu.MemorySpace.VMEM)]
                 * len(kernel_args),
        out_specs=pl.BlockSpec(memory_space=pltpu.MemorySpace.VMEM),
        compiler_params=pltpu.CompilerParams(vmem_limit_bytes=vmem_limit),
        cost_estimate=cost,
    )(*kernel_args)

    mu = out[:, :latent_dim]
    logvar = out[:, latent_dim:2 * latent_dim]
    return mu, logvar


def encoder_reference(x, params, num_hidden_layers, eps=1e-5):
    """Plain-JAX f32 reference matching PyTorch semantics (training-mode BN)."""
    h = x.astype(jnp.float32)
    idx = 0
    for _ in range(num_hidden_layers):
        w, b, gamma, beta = params[idx:idx + 4]
        idx += 4
        h = h @ w + b
        mean = jnp.mean(h, axis=0, keepdims=True)
        var = jnp.mean((h - mean) ** 2, axis=0, keepdims=True)
        h = (h - mean) / jnp.sqrt(var + eps) * gamma + beta
        h = jnp.maximum(h, 0.0)
    w_mu, b_mu, w_lv, b_lv = params[idx:idx + 4]
    return h @ w_mu + b_mu, h @ w_lv + b_lv


if __name__ == "__main__":
    # Small shapes consistent with the module: x is [batch, input_dim].
    batch = 8
    input_dim = 16
    hidden_dims = [32, 32]
    latent_dim = 8

    key = jax.random.PRNGKey(0)
    key, kx = jax.random.split(key)
    x = jax.random.normal(kx, (batch, input_dim), dtype=jnp.float32)
    params = init_encoder_params(key, input_dim, hidden_dims, latent_dim)

    mu_ref, logvar_ref = encoder_reference(x, params, len(hidden_dims))

    # f32 matmul path (exact-ish) -----------------------------------------
    prepared_f32 = prepare_encoder_params(params, use_bf16_matmul=False)
    mu, logvar = encoder_forward(
        x, prepared_f32, num_hidden_layers=len(hidden_dims),
        latent_dim=latent_dim)
    jax.block_until_ready((mu, logvar))
    assert mu.shape == (batch, latent_dim) and logvar.shape == (batch, latent_dim)
    assert jnp.allclose(mu, mu_ref, atol=1e-4, rtol=1e-4)
    assert jnp.allclose(logvar, logvar_ref, atol=1e-4, rtol=1e-4)

    # bf16 matmul path (default: MXU-friendly, half weight DMA bytes) ------
    prepared_bf16 = prepare_encoder_params(params, use_bf16_matmul=True)
    mu_bf, logvar_bf = encoder_forward(
        x, prepared_bf16, num_hidden_layers=len(hidden_dims),
        latent_dim=latent_dim)
    jax.block_until_ready((mu_bf, logvar_bf))
    assert jnp.allclose(mu_bf, mu_ref, atol=5e-2, rtol=5e-2)
    assert jnp.allclose(logvar_bf, logvar_ref, atol=5e-2, rtol=5e-2)

    print("KERNEL_OK")
</pallas_src>

<mosaic_0001>
module attributes {stable_mosaic.version = 11 : i64} {
  func.func @kernel(%arg0: memref<8x128xf32, #tpu.memory_space<vmem>>, %arg1: memref<128x128xf32, #tpu.memory_space<vmem>>, %arg2: memref<1x128xf32, #tpu.memory_space<vmem>>, %arg3: memref<1x128xf32, #tpu.memory_space<vmem>>, %arg4: memref<1x128xf32, #tpu.memory_space<vmem>>, %arg5: memref<128x128xf32, #tpu.memory_space<vmem>>, %arg6: memref<1x128xf32, #tpu.memory_space<vmem>>, %arg7: memref<1x128xf32, #tpu.memory_space<vmem>>, %arg8: memref<1x128xf32, #tpu.memory_space<vmem>>, %arg9: memref<128x128xf32, #tpu.memory_space<vmem>>, %arg10: memref<1x128xf32, #tpu.memory_space<vmem>>, %arg11: memref<8x128xf32, #tpu.memory_space<vmem>>) attributes {dimension_semantics = [], scalar_prefetch = 0 : i64, scratch_operands = 0 : i64, tpu.core_type = #tpu.core_type<tc>} {
    %c0 = arith.constant 0 : index
    %c0_0 = arith.constant 0 : index
    %0 = vector.load %arg0[%c0, %c0_0] : memref<8x128xf32, #tpu.memory_space<vmem>>, vector<8x128xf32>
    %c0_1 = arith.constant 0 : index
    %c0_2 = arith.constant 0 : index
    %1 = vector.load %arg1[%c0_1, %c0_2] : memref<128x128xf32, #tpu.memory_space<vmem>>, vector<128x128xf32>
    %c0_3 = arith.constant 0 : index
    %c0_4 = arith.constant 0 : index
    %2 = vector.load %arg2[%c0_3, %c0_4] : memref<1x128xf32, #tpu.memory_space<vmem>>, vector<1x128xf32>
    %c0_5 = arith.constant 0 : index
    %c0_6 = arith.constant 0 : index
    %3 = vector.load %arg3[%c0_5, %c0_6] : memref<1x128xf32, #tpu.memory_space<vmem>>, vector<1x128xf32>
    %c0_7 = arith.constant 0 : index
    %c0_8 = arith.constant 0 : index
    %4 = vector.load %arg4[%c0_7, %c0_8] : memref<1x128xf32, #tpu.memory_space<vmem>>, vector<1x128xf32>
    %cst = arith.constant dense<0.000000e+00> : vector<8x128xf32>
    %5 = tpu.matmul %0, %1, %cst {dimension_numbers = #tpu.dot_dimension_numbers<[1], [0], [0], [1], [0, 0, 1, 1], [], []>} : vector<8x128xf32>, vector<128x128xf32>, vector<8x128xf32> -> vector<8x128xf32>
    %6 = vector.broadcast %2 : vector<1x128xf32> to vector<8x128xf32>
    %7 = arith.addf %5, %6 : vector<8x128xf32>
    %cst_9 = arith.constant dense<0.000000e+00> : vector<128xf32>
    %8 = vector.multi_reduction <add>, %7, %cst_9 [0] : vector<8x128xf32> to vector<128xf32>
    %9 = vector.shape_cast %8 : vector<128xf32> to vector<1x128xf32>
    %cst_10 = arith.constant 1.250000e-01 : f32
    %10 = vector.broadcast %cst_10 : f32 to vector<1x128xf32>
    %11 = arith.mulf %9, %10 : vector<1x128xf32>
    %12 = vector.broadcast %11 : vector<1x128xf32> to vector<8x128xf32>
    %13 = arith.subf %7, %12 : vector<8x128xf32>
    %14 = arith.mulf %13, %13 : vector<8x128xf32>
    %cst_11 = arith.constant dense<0.000000e+00> : vector<128xf32>
    %15 = vector.multi_reduction <add>, %14, %cst_11 [0] : vector<8x128xf32> to vector<128xf32>
    %16 = vector.shape_cast %15 : vector<128xf32> to vector<1x128xf32>
    %cst_12 = arith.constant 1.250000e-01 : f32
    %17 = vector.broadcast %cst_12 : f32 to vector<1x128xf32>
    %18 = arith.mulf %16, %17 : vector<1x128xf32>
    %cst_13 = arith.constant 9.99999974E-6 : f32
    %19 = vector.broadcast %cst_13 : f32 to vector<1x128xf32>
    %20 = arith.addf %18, %19 : vector<1x128xf32>
    %21 = math.rsqrt %20 : vector<1x128xf32>
    %22 = arith.mulf %3, %21 : vector<1x128xf32>
    %23 = vector.broadcast %22 : vector<1x128xf32> to vector<8x128xf32>
    %24 = arith.mulf %13, %23 : vector<8x128xf32>
    %25 = vector.broadcast %4 : vector<1x128xf32> to vector<8x128xf32>
    %26 = arith.addf %24, %25 : vector<8x128xf32>
    %cst_14 = arith.constant 0.000000e+00 : f32
    %27 = vector.broadcast %cst_14 : f32 to vector<8x128xf32>
    %28 = arith.maximumf %26, %27 : vector<8x128xf32>
    %c0_15 = arith.constant 0 : index
    %c0_16 = arith.constant 0 : index
    %29 = vector.load %arg5[%c0_15, %c0_16] : memref<128x128xf32, #tpu.memory_space<vmem>>, vector<128x128xf32>
    %c0_17 = arith.constant 0 : index
    %c0_18 = arith.constant 0 : index
    %30 = vector.load %arg6[%c0_17, %c0_18] : memref<1x128xf32, #tpu.memory_space<vmem>>, vector<1x128xf32>
    %c0_19 = arith.constant 0 : index
    %c0_20 = arith.constant 0 : index
    %31 = vector.load %arg7[%c0_19, %c0_20] : memref<1x128xf32, #tpu.memory_space<vmem>>, vector<1x128xf32>
    %c0_21 = arith.constant 0 : index
    %c0_22 = arith.constant 0 : index
    %32 = vector.load %arg8[%c0_21, %c0_22] : memref<1x128xf32, #tpu.memory_space<vmem>>, vector<1x128xf32>
    %cst_23 = arith.constant dense<0.000000e+00> : vector<8x128xf32>
    %33 = tpu.matmul %28, %29, %cst_23 {dimension_numbers = #tpu.dot_dimension_numbers<[1], [0], [0], [1], [0, 0, 1, 1], [], []>} : vector<8x128xf32>, vector<128x128xf32>, vector<8x128xf32> -> vector<8x128xf32>
    %34 = vector.broadcast %30 : vector<1x128xf32> to vector<8x128xf32>
    %35 = arith.addf %33, %34 : vector<8x128xf32>
    %cst_24 = arith.constant dense<0.000000e+00> : vector<128xf32>
    %36 = vector.multi_reduction <add>, %35, %cst_24 [0] : vector<8x128xf32> to vector<128xf32>
    %37 = vector.shape_cast %36 : vector<128xf32> to vector<1x128xf32>
    %cst_25 = arith.constant 1.250000e-01 : f32
    %38 = vector.broadcast %cst_25 : f32 to vector<1x128xf32>
    %39 = arith.mulf %37, %38 : vector<1x128xf32>
    %40 = vector.broadcast %39 : vector<1x128xf32> to vector<8x128xf32>
    %41 = arith.subf %35, %40 : vector<8x128xf32>
    %42 = arith.mulf %41, %41 : vector<8x128xf32>
    %cst_26 = arith.constant dense<0.000000e+00> : vector<128xf32>
    %43 = vector.multi_reduction <add>, %42, %cst_26 [0] : vector<8x128xf32> to vector<128xf32>
    %44 = vector.shape_cast %43 : vector<128xf32> to vector<1x128xf32>
    %cst_27 = arith.constant 1.250000e-01 : f32
    %45 = vector.broadcast %cst_27 : f32 to vector<1x128xf32>
    %46 = arith.mulf %44, %45 : vector<1x128xf32>
    %cst_28 = arith.constant 9.99999974E-6 : f32
    %47 = vector.broadcast %cst_28 : f32 to vector<1x128xf32>
    %48 = arith.addf %46, %47 : vector<1x128xf32>
    %49 = math.rsqrt %48 : vector<1x128xf32>
    %50 = arith.mulf %31, %49 : vector<1x128xf32>
    %51 = vector.broadcast %50 : vector<1x128xf32> to vector<8x128xf32>
    %52 = arith.mulf %41, %51 : vector<8x128xf32>
    %53 = vector.broadcast %32 : vector<1x128xf32> to vector<8x128xf32>
    %54 = arith.addf %52, %53 : vector<8x128xf32>
    %cst_29 = arith.constant 0.000000e+00 : f32
    %55 = vector.broadcast %cst_29 : f32 to vector<8x128xf32>
    %56 = arith.maximumf %54, %55 : vector<8x128xf32>
    %c0_30 = arith.constant 0 : index
    %c0_31 = arith.constant 0 : index
    %57 = vector.load %arg9[%c0_30, %c0_31] : memref<128x128xf32, #tpu.memory_space<vmem>>, vector<128x128xf32>
    %c0_32 = arith.constant 0 : index
    %c0_33 = arith.constant 0 : index
    %58 = vector.load %arg10[%c0_32, %c0_33] : memref<1x128xf32, #tpu.memory_space<vmem>>, vector<1x128xf32>
    %cst_34 = arith.constant dense<0.000000e+00> : vector<8x128xf32>
    %59 = tpu.matmul %56, %57, %cst_34 {dimension_numbers = #tpu.dot_dimension_numbers<[1], [0], [0], [1], [0, 0, 1, 1], [], []>} : vector<8x128xf32>, vector<128x128xf32>, vector<8x128xf32> -> vector<8x128xf32>
    %60 = vector.broadcast %58 : vector<1x128xf32> to vector<8x128xf32>
    %61 = arith.addf %59, %60 : vector<8x128xf32>
    %c0_35 = arith.constant 0 : index
    %c0_36 = arith.constant 0 : index
    %62 = vector.load %arg11[%c0_35, %c0_36] : memref<8x128xf32, #tpu.memory_space<vmem>>, vector<8x128xf32>
    tpu.vector_store %arg11[%c0_35, %c0_36], %61 {strides = array<i32>} : memref<8x128xf32, #tpu.memory_space<vmem>>, vector<8x128xf32>,
    return
  }
}

</mosaic_0001>

<bundles_post_ra>
// kernel: encoder_forward.1
= control target key start
LH: loop header
LB: loop body
LE: loop exit
PB: predicated region body
PF: predicated region fallthrough
CT: control target
= control target key end

     0   :  { %16 = vsyncpa [#allocation3], 0  ;;  %s838_s0 = inlined_call_operand.vmem [shape: f32[8,128], index: 0, kind: input, shape index: {}]   ;;  %s839_s1 = inlined_call_operand.hbm [shape: f32[128,128], index: 1, kind: input, shape index: {}]   ;;  %s840_s2 = inlined_call_operand.vmem [shape: f32[1,128], index: 2, kind: input, shape index: {}]   ;;  %s841_s3 = inlined_call_operand.vmem [shape: f32[1,128], index: 3, kind: input, shape index: {}]   ;;  %s842_s4 = inlined_call_operand.vmem [shape: f32[1,128], index: 4, kind: input, shape index: {}]   ;;  %s843_s5 = inlined_call_operand.hbm [shape: f32[128,128], index: 5, kind: input, shape index: {}]   ;;  %s844_s6 = inlined_call_operand.vmem [shape: f32[1,128], index: 6, kind: input, shape index: {}]   ;;  %s845_s7 = inlined_call_operand.vmem [shape: f32[1,128], index: 7, kind: input, shape index: {}]   ;;  %s846_s8 = inlined_call_operand.vmem [shape: f32[1,128], index: 8, kind: input, shape index: {}]   ;;  %s847_s9 = inlined_call_operand.hbm [shape: f32[128,128], index: 9, kind: input, shape index: {}]   ;;  %s848_s10 = inlined_call_operand.vmem [shape: f32[1,128], index: 10, kind: input, shape index: {}]   ;;  %s849_s11 = inlined_call_operand.vmem [shape: f32[8,128], index: 11, kind: output, shape index: {}]  }
   0x1   :  { %17 = vsyncpa [#allocation5], 0  ;;  %s674_s17 = smov [#allocation4]   ;;  %s675_s19 = smov [#allocation2]  }
   0x2   :  { %s43_s18 = sshll.u32 %s674_s17, 4  ;;  %s25_s20 = sshll.u32 %s675_s19, 4  ;;  %s44_s18 = int_to_ptr.vmem [resolvable:$true] %s43_s18  ;;  %s26_s20 = int_to_ptr.vmem [resolvable:$true] %s25_s20 }
   0x3   :  { %s618_s21 = scalar_lea.vmem %s44_s18, 2048  ;;  %p623_p1 = scmp.lt.s32.totalorder %s44_s18, %s44_s18 }
   0x4   :  { %p619_p0 = scmp.ne.s32.totalorder %s44_s18, %s618_s21  ;;  %p624_p2 = scmp.lt.s32.totalorder %s618_s21, %s618_s21 }
   0x6   :  { %p625_p3 = por %p624_p2, %p623_p1 }
   0x8   :  { %p626_p4 = pnand %p625_p3, %p619_p0 }
   0xa   :  { %629 = shalt.err (!%p626_p4)
}
   0xb   :  { %s676_s22 = smov 128   ;;  %s677_s23 = smov 8  }
   0xc   :  { %49 = dma.hbm_to_vmem [thread:$0]  %s843_s5, 2048, %s44_s18, [#allocation5], %s676_s22, %s676_s22, %s677_s23  }
   0xd   :  { %s638_s26 = scalar_lea.vmem %s26_s20, 2048  ;;  %p643_p6 = scmp.lt.s32.totalorder %s26_s20, %s26_s20 }
   0xe   :  { %p639_p5 = scmp.ne.s32.totalorder %s26_s20, %s638_s26  ;;  %p644_p7 = scmp.lt.s32.totalorder %s638_s26, %s638_s26 }
  0x10   :  { %p645_p8 = por %p644_p7, %p643_p6 }
  0x12   :  { %p646_p9 = pnand %p645_p8, %p639_p5 }
  0x14   :  { %649 = shalt.err (!%p646_p9)
}
  0x15   :  { %31 = dma.hbm_to_vmem [thread:$0]  %s839_s1, 2048, %s26_s20, [#allocation3], %s676_s22, %s676_s22, %s677_s23  }
  0x16   :  { %s678_s29 = smov [#allocation6]  }
  0x17   :  { %s61_s30 = sshll.u32 %s678_s29, 4  ;;  %s62_s30 = int_to_ptr.vmem [resolvable:$true] %s61_s30 }
  0x18   :  { %s658_s12 = scalar_lea.vmem %s62_s30, 2048  ;;  %p663_p11 = scmp.lt.s32.totalorder %s62_s30, %s62_s30 }
  0x19   :  { %p659_p10 = scmp.ne.s32.totalorder %s62_s30, %s658_s12  ;;  %p664_p12 = scmp.lt.s32.totalorder %s658_s12, %s658_s12 }
  0x1b   :  { %p665_p13 = por %p664_p12, %p663_p11 }
  0x1d   :  { %p666_p0 = pnand %p665_p13, %p659_p10 }
  0x1f   :  { %669 = shalt.err (!%p666_p0)
}
  0x20   :  { %67 = dma.hbm_to_vmem [thread:$0]  %s847_s9, 2048, %s62_s30, [#allocation5], %s676_s22, %s676_s22, %s677_s23  }
  0x21   :  { %670 = dma.done.wait [#allocation3], 2048  }
  0x22   :  { %671 = vsyncadd [#allocation3], 4294965248 }
  0x23   :  { %672 = dma.done.wait [#allocation5], 4096  }
  0x24   :  { %673 = vsyncadd [#allocation5], 4294963200  ;;  %v679_v0 = vmov 0.0   ;;  %vm680_vm0 = vmmov 0   ;;  %v95_v1 = vld [vmem:[#allocation2 + $0x78] sm:$0xff]  ;;  %v94_v2 = vld [vmem:[#allocation2 + $0x70] sm:$0xff]  ;;  %v195_v55 = vlaneseq }
  0x25   :  { %494 = vmatprep.subr.mxu0 %v679_v0  ;;  %526 = vmatprep.mubr.msk.f32.mxu0 %vm680_vm0, %v679_v0  ;;  %v93_v3 = vld [vmem:[#allocation2 + $0x68] sm:$0xff]  ;;  %v92_v4 = vld [vmem:[#allocation2 + $0x60] sm:$0xff]  ;;  %v91_v5 = vld [vmem:[#allocation2 + $0x58] sm:$0xff] }
  0x26   :  { %529 = vmatprep.subr.mxu1 %v679_v0  ;;  %561 = vmatprep.mubr.msk.f32.mxu1 %vm680_vm0, %v679_v0  ;;  %v90_v6 = vld [vmem:[#allocation2 + $0x50] sm:$0xff]  ;;  %v89_v7 = vld [vmem:[#allocation2 + $0x48] sm:$0xff]  ;;  %v88_v8 = vld [vmem:[#allocation2 + $0x40] sm:$0xff]  ;;  %v795_v56 = vshrl.u32 %v195_v55, 7 }
  0x27   :  { %495 = vmatpush3.msra.mxu0 %v95_v1  ;;  %v87_v9 = vld [vmem:[#allocation2 + $0x38] sm:$0xff]  ;;  %v86_v10 = vld [vmem:[#allocation2 + $0x30] sm:$0xff]  ;;  %v85_v11 = vld [vmem:[#allocation2 + $0x28] sm:$0xff] }
  0x28   :  { %496 = vmatprep.subr.mxu0 %v679_v0  ;;  %v84_v12 = vld [vmem:[#allocation2 + $0x20] sm:$0xff]  ;;  %v83_v13 = vld [vmem:[#allocation2 + $0x18] sm:$0xff]  ;;  %v82_v14 = vld [vmem:[#allocation2 + $0x10] sm:$0xff]  ;;  %v197_v58 = vsub.s32 0, %v795_v56 }
  0x29   :  { %497 = vmatpush3.msra.mxu0 %v94_v2  ;;  %v81_v15 = vld [vmem:[#allocation2 + $0x8] sm:$0xff]  ;;  %v80_v16 = vld [vmem:[#allocation2] sm:$0xff]  ;;  %v224_v18 = vld [vmem:[#allocation4 + $0x78] sm:$0xff] }
  0x2a   :  { %498 = vmatprep.subr.mxu0 %v679_v0  ;;  %v79_v17 = vld [vmem:[%s838_s0] sm:$0xff]  ;;  %530 = vmatpush3.msra.mxu1 %v224_v18  ;;  %v223_v19 = vld [vmem:[#allocation4 + $0x70] sm:$0xff]  ;;  %v222_v20 = vld [vmem:[#allocation4 + $0x68] sm:$0xff] }
  0x2b   :  { %499 = vmatpush3.msra.mxu0 %v93_v3  ;;  %531 = vmatprep.subr.mxu1 %v679_v0  ;;  %v221_v21 = vld [vmem:[#allocation4 + $0x60] sm:$0xff]  ;;  %v220_v22 = vld [vmem:[#allocation4 + $0x58] sm:$0xff]  ;;  %v219_v23 = vld [vmem:[#allocation4 + $0x50] sm:$0xff] }
  0x2c   :  { %500 = vmatprep.subr.mxu0 %v679_v0  ;;  %532 = vmatpush3.msra.mxu1 %v223_v19  ;;  %v218_v24 = vld [vmem:[#allocation4 + $0x48] sm:$0xff]  ;;  %v217_v25 = vld [vmem:[#allocation4 + $0x40] sm:$0xff]  ;;  %v216_v26 = vld [vmem:[#allocation4 + $0x38] sm:$0xff] }
  0x2d   :  { %501 = vmatpush3.msra.mxu0 %v92_v4  ;;  %533 = vmatprep.subr.mxu1 %v679_v0  ;;  %v215_v27 = vld [vmem:[#allocation4 + $0x30] sm:$0xff]  ;;  %v214_v28 = vld [vmem:[#allocation4 + $0x28] sm:$0xff]  ;;  %v213_v29 = vld [vmem:[#allocation4 + $0x20] sm:$0xff] }
  0x2e   :  { %502 = vmatprep.subr.mxu0 %v679_v0  ;;  %534 = vmatpush3.msra.mxu1 %v222_v20  ;;  %v212_v30 = vld [vmem:[#allocation4 + $0x18] sm:$0xff]  ;;  %v211_v31 = vld [vmem:[#allocation4 + $0x10] sm:$0xff]  ;;  %v210_v32 = vld [vmem:[#allocation4 + $0x8] sm:$0xff] }
  0x2f   :  { %503 = vmatpush3.msra.mxu0 %v91_v5  ;;  %535 = vmatprep.subr.mxu1 %v679_v0  ;;  %v209_v33 = vld [vmem:[#allocation4] sm:$0xff]  ;;  %v353_v3 = vld [vmem:[#allocation6 + $0x78] sm:$0xff]  ;;  %v352_v4 = vld [vmem:[#allocation6 + $0x70] sm:$0xff] }
  0x30   :  { %504 = vmatprep.subr.mxu0 %v679_v0  ;;  %536 = vmatpush3.msra.mxu1 %v221_v21  ;;  %v438_v34 = vld [vmem:[%s840_s2] ss:$0 sm:$0xff]  ;;  %v351_v5 = vld [vmem:[#allocation6 + $0x68] sm:$0xff] }
  0x31   :  { %505 = vmatpush3.msra.mxu0 %v90_v6  ;;  %537 = vmatprep.subr.mxu1 %v679_v0  ;;  %v97_v57 = vld [vmem:[%s841_s3] sm:$0x1] }
  0x32   :  { %506 = vmatprep.subr.mxu0 %v679_v0  ;;  %538 = vmatpush3.msra.mxu1 %v220_v22  ;;  %v439_v62 = vld [vmem:[%s842_s4] ss:$0 sm:$0xff] }
  0x33   :  { %507 = vmatpush3.msra.mxu0 %v89_v7  ;;  %539 = vmatprep.subr.mxu1 %v679_v0  ;;  %v350_v6 = vld [vmem:[#allocation6 + $0x60] sm:$0xff]  ;;  %v349_v7 = vld [vmem:[#allocation6 + $0x58] sm:$0xff] }
  0x34   :  { %508 = vmatprep.subr.mxu0 %v679_v0  ;;  %540 = vmatpush3.msra.mxu1 %v219_v23  ;;  %v338_v18 = vld [vmem:[#allocation6] sm:$0xff] }
  0x35   :  { %509 = vmatpush3.msra.mxu0 %v88_v8  ;;  %541 = vmatprep.subr.mxu1 %v679_v0  ;;  %v348_v8 = vld [vmem:[#allocation6 + $0x50] sm:$0xff]  ;;  %v440_v19 = vld [vmem:[%s844_s6] ss:$0 sm:$0xff] }
  0x36   :  { %510 = vmatprep.subr.mxu0 %v679_v0  ;;  %542 = vmatpush3.msra.mxu1 %v218_v24 }
  0x37   :  { %511 = vmatpush3.msra.mxu0 %v87_v9  ;;  %543 = vmatprep.subr.mxu1 %v679_v0  ;;  %v347_v9 = vld [vmem:[#allocation6 + $0x48] sm:$0xff] }
  0x38   :  { %512 = vmatprep.subr.mxu0 %v679_v0  ;;  %544 = vmatpush3.msra.mxu1 %v217_v25 }
  0x39   :  { %513 = vmatpush3.msra.mxu0 %v86_v10  ;;  %545 = vmatprep.subr.mxu1 %v679_v0  ;;  %v346_v10 = vld [vmem:[#allocation6 + $0x40] sm:$0xff] }
  0x3a   :  { %514 = vmatprep.subr.mxu0 %v679_v0  ;;  %546 = vmatpush3.msra.mxu1 %v216_v26 }
  0x3b   :  { %515 = vmatpush3.msra.mxu0 %v85_v11  ;;  %547 = vmatprep.subr.mxu1 %v679_v0  ;;  %v345_v11 = vld [vmem:[#allocation6 + $0x38] sm:$0xff] }
  0x3c   :  { %516 = vmatprep.subr.mxu0 %v679_v0  ;;  %548 = vmatpush3.msra.mxu1 %v215_v27 }
  0x3d   :  { %517 = vmatpush3.msra.mxu0 %v84_v12  ;;  %549 = vmatprep.subr.mxu1 %v679_v0  ;;  %v344_v12 = vld [vmem:[#allocation6 + $0x30] sm:$0xff] }
  0x3e   :  { %518 = vmatprep.subr.mxu0 %v679_v0  ;;  %550 = vmatpush3.msra.mxu1 %v214_v28 }
  0x3f   :  { %519 = vmatpush3.msra.mxu0 %v83_v13  ;;  %551 = vmatprep.subr.mxu1 %v679_v0  ;;  %v343_v13 = vld [vmem:[#allocation6 + $0x28] sm:$0xff] }
  0x40   :  { %520 = vmatprep.subr.mxu0 %v679_v0  ;;  %552 = vmatpush3.msra.mxu1 %v213_v29 }
  0x41   :  { %521 = vmatpush3.msra.mxu0 %v82_v14  ;;  %553 = vmatprep.subr.mxu1 %v679_v0  ;;  %v342_v14 = vld [vmem:[#allocation6 + $0x20] sm:$0xff] }
  0x42   :  { %522 = vmatprep.subr.mxu0 %v679_v0  ;;  %554 = vmatpush3.msra.mxu1 %v212_v30 }
  0x43   :  { %523 = vmatpush3.msra.mxu0 %v81_v15  ;;  %555 = vmatprep.subr.mxu1 %v679_v0  ;;  %v341_v15 = vld [vmem:[#allocation6 + $0x18] sm:$0xff] }
  0x44   :  { %524 = vmatprep.subr.mxu0 %v679_v0  ;;  %556 = vmatpush3.msra.mxu1 %v211_v31 }
  0x45   :  { %525 = vmatpush3.msra.mxu0 %v80_v16  ;;  %557 = vmatprep.subr.mxu1 %v679_v0  ;;  %v340_v16 = vld [vmem:[#allocation6 + $0x10] sm:$0xff] }
  0x46   :  { %527 = vmatmul.mubr.f32.vlgmr.msra.gmra.mxu0 %v79_v17  ;;  %564 = vmatprep.subr.mxu0 %v679_v0  ;;  %v339_v17 = vld [vmem:[#allocation6 + $0x8] sm:$0xff] }
  0x47   :  { %596 = vmatprep.mubr.msk.f32.mxu0 %vm680_vm0, %v679_v0  ;;  %558 = vmatpush3.msra.mxu1 %v210_v32 }
  0x48   :  { %559 = vmatprep.subr.mxu1 %v679_v0  ;;  %565 = vmatpush3.msra.mxu0 %v353_v3 }
  0x49   :  { %560 = vmatpush3.msra.mxu1 %v209_v33  ;;  %566 = vmatprep.subr.mxu0 %v679_v0 }
  0x4a   :  { %567 = vmatpush3.msra.mxu0 %v352_v4 }
  0x4b   :  { %568 = vmatprep.subr.mxu0 %v679_v0 }
  0x4c   :  { %569 = vmatpush3.msra.mxu0 %v351_v5 }
  0x4d   :  { %570 = vmatprep.subr.mxu0 %v679_v0 }
  0x4e   :  { %571 = vmatpush3.msra.mxu0 %v350_v6 }
  0x4f   :  { %572 = vmatprep.subr.mxu0 %v679_v0 }
  0x50   :  { %573 = vmatpush3.msra.mxu0 %v349_v7 }
  0x51   :  { %574 = vmatprep.subr.mxu0 %v679_v0 }
  0x52   :  { %575 = vmatpush3.msra.mxu0 %v348_v8 }
  0x53   :  { %576 = vmatprep.subr.mxu0 %v679_v0 }
  0x54   :  { %577 = vmatpush3.msra.mxu0 %v347_v9 }
  0x55   :  { %578 = vmatprep.subr.mxu0 %v679_v0 }
  0x56   :  { %579 = vmatpush3.msra.mxu0 %v346_v10 }
  0x57   :  { %580 = vmatprep.subr.mxu0 %v679_v0 }
  0x58   :  { %581 = vmatpush3.msra.mxu0 %v345_v11 }
  0x59   :  { %582 = vmatprep.subr.mxu0 %v679_v0 }
  0x5a   :  { %583 = vmatpush3.msra.mxu0 %v344_v12 }
  0x5b   :  { %584 = vmatprep.subr.mxu0 %v679_v0 }
  0x5c   :  { %585 = vmatpush3.msra.mxu0 %v343_v13 }
  0x5d   :  { %586 = vmatprep.subr.mxu0 %v679_v0 }
  0x5e   :  { %587 = vmatpush3.msra.mxu0 %v342_v14 }
  0x5f   :  { %588 = vmatprep.subr.mxu0 %v679_v0 }
  0x60   :  { %589 = vmatpush3.msra.mxu0 %v341_v15 }
  0x61   :  { %590 = vmatprep.subr.mxu0 %v679_v0 }
  0x62   :  { %591 = vmatpush3.msra.mxu0 %v340_v16 }
  0x63   :  { %592 = vmatprep.subr.mxu0 %v679_v0 }
  0x64   :  { %593 = vmatpush3.msra.mxu0 %v339_v17 }
  0x65   :  { %594 = vmatprep.subr.mxu0 %v679_v0 }
  0x66   :  { %595 = vmatpush3.msra.mxu0 %v338_v18 }
 0x106   :  { %v171_v35 = vpop.f32.mrf.mxu0 }
 0x107   :  { %v172_v36 = vadd.f32 %v438_v34, %v171_v35 }
 0x108   :  { %v528_v37 = vpop.f32.mrf.mxu0 }
 0x109   :  { %v175_v38 = vrot.slane %v172_v36, 4 }
 0x10b   :  { %v176_v39 = vadd.f32 %v175_v38, %v172_v36 }
 0x10d   :  { %v177_v40 = vrot.slane %v176_v39, 2 }
 0x10f   :  { %v178_v41 = vadd.f32 %v177_v40, %v176_v39  ;;  %v226_v39 = vld [vmem:[%s845_s7] sm:$0x1] }
 0x111   :  { %v179_v42 = vrot.slane %v178_v41, 1 }
 0x113   :  { %v180_v43 = vadd.f32 %v179_v42, %v178_v41 }
 0x115   :  { %v181_v44 = vmul.f32 0.125, %v180_v43  ;;  %v441_v43 = vld [vmem:[%s846_s8] ss:$0 sm:$0xff] }
 0x117   :  { %v182_v45 = vsub.f32 %v172_v36, %v181_v44 }
 0x119   :  { %v183_v46 = vmul.f32 %v182_v45, %v182_v45 }
 0x11b   :  { %v184_v47 = vrot.slane %v183_v46, 4 }
 0x11d   :  { %v185_v48 = vadd.f32 %v184_v47, %v183_v46  ;;  %v442_v47 = vld [vmem:[%s848_s10] ss:$0 sm:$0xff] }
 0x11f   :  { %v186_v49 = vrot.slane %v185_v48, 2 }
 0x121   :  { %v187_v50 = vadd.f32 %v186_v49, %v185_v48 }
 0x123   :  { %v188_v51 = vrot.slane %v187_v50, 1 }
 0x125   :  { %v189_v52 = vadd.f32 %v188_v51, %v187_v50 }
 0x127   :  { %v190_v53 = vmul.f32 0.125, %v189_v52 }
 0x129   :  { %v191_v54 = vadd.f32 1e-05, %v190_v53 }
 0x12b   :  { %606 = vrsqrt.f32 %v191_v54 }
 0x138   :  { %v607_v59 = vpop.eup %606 }
 0x139   :  { %v193_v60 = vmul.f32 %v607_v59, %v97_v57 }
 0x13b   :  { %v198_v61 = vrot.slane %v193_v60, %v197_v58 }
 0x13d   :  { %v200_v63 = vmul.f32 %v198_v61, %v182_v45 }
 0x13f   :  { %v207_v1 = vadd.f32 %v439_v62, %v200_v63 }
 0x141   :  { %v208_v2 = vmax.f32 %v207_v1, 0.0 }
 0x143   :  { %562 = vmatmul.mubr.f32.vlgmr.msra.gmra.mxu1 %v208_v2 }
 0x203   :  { %v300_v20 = vpop.f32.mrf.mxu1 }
 0x204   :  { %v301_v21 = vadd.f32 %v440_v19, %v300_v20 }
 0x205   :  { %v563_v22 = vpop.f32.mrf.mxu1 }
 0x206   :  { %v304_v23 = vrot.slane %v301_v21, 4 }
 0x208   :  { %v305_v24 = vadd.f32 %v304_v23, %v301_v21 }
 0x20a   :  { %v306_v25 = vrot.slane %v305_v24, 2 }
 0x20c   :  { %v307_v26 = vadd.f32 %v306_v25, %v305_v24 }
 0x20e   :  { %v308_v27 = vrot.slane %v307_v26, 1 }
 0x210   :  { %v309_v28 = vadd.f32 %v308_v27, %v307_v26 }
 0x212   :  { %v310_v29 = vmul.f32 0.125, %v309_v28 }
 0x214   :  { %v311_v30 = vsub.f32 %v301_v21, %v310_v29 }
 0x216   :  { %v312_v31 = vmul.f32 %v311_v30, %v311_v30 }
 0x218   :  { %v313_v32 = vrot.slane %v312_v31, 4 }
 0x21a   :  { %v314_v33 = vadd.f32 %v313_v32, %v312_v31 }
 0x21c   :  { %v315_v0 = vrot.slane %v314_v33, 2 }
 0x21e   :  { %v316_v34 = vadd.f32 %v315_v0, %v314_v33 }
 0x220   :  { %v317_v35 = vrot.slane %v316_v34, 1 }
 0x222   :  { %v318_v36 = vadd.f32 %v317_v35, %v316_v34 }
 0x224   :  { %v319_v37 = vmul.f32 0.125, %v318_v36 }
 0x226   :  { %v320_v38 = vadd.f32 1e-05, %v319_v37 }
 0x228   :  { %608 = vrsqrt.f32 %v320_v38 }
 0x235   :  { %v609_v40 = vpop.eup %608 }
 0x236   :  { %v322_v41 = vmul.f32 %v609_v40, %v226_v39 }
 0x238   :  { %v327_v42 = vrot.slane %v322_v41, %v197_v58 }
 0x23a   :  { %v329_v44 = vmul.f32 %v327_v42, %v311_v30 }
 0x23c   :  { %v336_v45 = vadd.f32 %v441_v43, %v329_v44 }
 0x23e   :  { %v337_v46 = vmax.f32 %v336_v45, 0.0 }
 0x240   :  { %597 = vmatmul.mubr.f32.vlgmr.msra.gmra.mxu0 %v337_v46 }
 0x300   :  { %v427_v48 = vpop.f32.mrf.mxu0 }
 0x301   :  { %v428_v49 = vadd.f32 %v442_v47, %v427_v48 }
 0x302   :  { %v598_v50 = vpop.f32.mrf.mxu0 }
 0x303   :  { %431 = vst [vmem:[%s849_s11] sm:$0xff] %v428_v49 }
 0x304   :  { %436 = vsyncpa [#allocation3], 1 }
 0x305   :  { %437 = vsyncpa [#allocation5], 1 }

</bundles_post_ra>
